<compile_context>
chip_gen: v6e
topology: v6e:2x2x1
jax: 0.10.0
libtpu: 0.0.40
codegen_flags: <defaults>
</compile_context>

<pallas_src>
import functools

import jax
import jax.numpy as jnp
from jax.experimental import pallas as pl
from jax.experimental.pallas import tpu as pltpu


# ----------------------------------------------------------------------------
# Small helpers
# ----------------------------------------------------------------------------
def _round_up(v, m):
    return ((v + m - 1) // m) * m


def _pad_to(a, shape):
    pads = [(0, s - d) for d, s in zip(a.shape, shape)]
    if any(p[1] for p in pads):
        return jnp.pad(a, pads)
    return a


def _apply_activation(y, activation):
    # f32 epilogue math (VPU/EUP); `activation` is a static Python string.
    if activation == "relu":
        return jnp.maximum(y, 0.0)
    if activation == "lrelu":
        return jnp.where(y > 0, y, 0.2 * y)
    if activation == "tanh":
        return jnp.tanh(y)
    if activation == "selu":
        alpha = 1.6732632423543772
        scale = 1.0507009873554805
        return scale * jnp.where(y > 0, y, alpha * (jnp.exp(y) - 1.0))
    if activation == "none":
        return y
    # TODO(synk): 'prelu' carries a learned slope parameter; not wired into the kernel.
    raise NotImplementedError(f"activation={activation!r}")


def _l2normalize(v, eps=1e-12):
    return v / (jnp.linalg.norm(v) + eps)


def spectral_norm_power_iteration(w, u, power_iterations=1, eps=1e-12):
    """SpectralNorm._update_u_v equivalent (plain JAX, tiny matvecs).

    Returns (sigma, u_new, v_new). PyTorch updates the `u` buffer in place, so
    callers must persist u_new (and v_new) across calls to match semantics.
    """
    height = w.shape[0]
    w2 = w.reshape(height, -1)
    v = None
    for _ in range(power_iterations):
        v = _l2normalize(w2.T @ u, eps)
        u = _l2normalize(w2 @ v, eps)
    sigma = u @ (w2 @ v)
    return sigma, u, v


@functools.lru_cache(maxsize=1)
def _vmem_limit_bytes():
    # Gate the VMEM budget on the actual part (v5e/v6e: 128 MiB, v7x: 64 MiB).
    cap = 64 * 1024 * 1024  # conservative fallback (fits every generation)
    try:
        cap = int(pltpu.get_tpu_info().vmem_capacity_bytes)
    except Exception:
        pass
    return max(32 * 1024 * 1024, min(96 * 1024 * 1024, (cap * 3) // 4))


def _pick_tile_128(dim_padded, cap):
    """Largest multiple of 128 <= cap that evenly divides dim_padded."""
    if dim_padded <= cap:
        return dim_padded
    t = (cap // 128) * 128
    while t > 128:
        if dim_padded % t == 0:
            return t
        t -= 128
    return 128


# ----------------------------------------------------------------------------
# One-time parameter preparation (hoisted out of the forward path)
# ----------------------------------------------------------------------------
def prepare_linear_params(w, b, compute_dtype=jnp.bfloat16):
    """Prep nn.Linear params once: transpose (out,in)->(in,out), pad to
    lane-aligned multiples of 128, cast to the MXU compute dtype.
    Cache/reuse the returned dict across forward calls."""
    N, K = w.shape
    Kp = _round_up(K, 128)
    Np = _round_up(N, 128)
    w_pad = _pad_to(jnp.transpose(w), (Kp, Np)).astype(compute_dtype)
    b_pad = _pad_to(b.reshape(1, N), (1, Np)).astype(jnp.float32)
    return {"w_pad": w_pad, "b_pad": b_pad, "in_dim": K, "out_dim": N,
            "w_raw": w}


# ----------------------------------------------------------------------------
# Pallas kernels
# ----------------------------------------------------------------------------
def _linear_kernel(x_ref, w_ref, b_ref, s_ref, o_ref, acc_ref, *,
                   activation, use_scale):
    # x_ref: (tm, tk) bf16, w_ref: (tk, tn) bf16, b_ref: (1, tn) f32,
    # s_ref: (1,) f32 in SMEM (1/sigma for spectral norm), acc_ref: f32 VMEM.
    k = pl.program_id(2)
    prod = jnp.dot(x_ref[...], w_ref[...], preferred_element_type=jnp.float32)

    @pl.when(k == 0)
    def _():
        acc_ref[...] = prod            # assign on first K step (no zero+add)

    @pl.when(k != 0)
    def _():
        acc_ref[...] += prod

    @pl.when(k == pl.num_programs(2) - 1)
    def _():
        y = acc_ref[...]
        if use_scale:
            y = y * s_ref[0]           # spectral-norm 1/sigma
        y = y + b_ref[...]
        y = _apply_activation(y, activation)
        o_ref[...] = y.astype(o_ref.dtype)


def _linear_ln_kernel(x_ref, w_ref, b_ref, s_ref, g_ref, bt_ref, o_ref,
                      acc_ref, *, activation, use_scale, n_feat, eps, affine):
    # Fused fc + custom-LayerNorm + activation. Requires tn == Np (whole row
    # of output features resident per M tile).
    k = pl.program_id(2)
    prod = jnp.dot(x_ref[...], w_ref[...], preferred_element_type=jnp.float32)

    @pl.when(k == 0)
    def _():
        acc_ref[...] = prod

    @pl.when(k != 0)
    def _():
        acc_ref[...] += prod

    @pl.when(k == pl.num_programs(2) - 1)
    def _():
        y = acc_ref[...]
        if use_scale:
            y = y * s_ref[0]
        y = y + b_ref[...]
        # Padded feature columns are exactly zero (zero-padded weights & bias),
        # so the raw sum with the true n_feat divisor is exact.
        mean = jnp.sum(y, axis=-1, keepdims=True) * (1.0 / n_feat)
        # Centered (numerically stable) unbiased variance; mask padded cols.
        col = jax.lax.broadcasted_iota(jnp.int32, y.shape, 1)
        d = jnp.where(col < n_feat, y - mean, 0.0)
        var = jnp.sum(d * d, axis=-1, keepdims=True) * (1.0 / max(n_feat - 1, 1))
        std = jnp.sqrt(var)
        yn = (y - mean) * pl.reciprocal(std + eps, approx=True)
        if affine:
            yn = yn * g_ref[...] + bt_ref[...]
        yn = _apply_activation(yn, activation)
        o_ref[...] = yn.astype(o_ref.dtype)


def _layernorm_act_kernel(x_ref, g_ref, bt_ref, o_ref, *, n_feat, eps, affine,
                          activation):
    # Standalone LN pass (fallback for very wide feature dims).
    x = x_ref[...].astype(jnp.float32)
    mean = jnp.sum(x, axis=-1, keepdims=True) * (1.0 / n_feat)
    col = jax.lax.broadcasted_iota(jnp.int32, x.shape, 1)
    d = jnp.where(col < n_feat, x - mean, 0.0)
    var = jnp.sum(d * d, axis=-1, keepdims=True) * (1.0 / max(n_feat - 1, 1))
    std = jnp.sqrt(var)
    y = (x - mean) * pl.reciprocal(std + eps, approx=True)
    if affine:
        y = y * g_ref[...] + bt_ref[...]
    y = _apply_activation(y, activation)
    o_ref[...] = y.astype(o_ref.dtype)


# ----------------------------------------------------------------------------
# pallas_call wrappers
# ----------------------------------------------------------------------------
def _matmul_pallas(x, prepared, activation, *, out_dtype, inv_sigma=None,
                   ln=None, compute_dtype=jnp.bfloat16):
    K = prepared["in_dim"]
    N = prepared["out_dim"]
    w_pad = prepared["w_pad"]
    b_pad = prepared["b_pad"]
    Kp, Np = w_pad.shape
    M = x.shape[0]
    fuse_ln = ln is not None

    # ---- tile selection ----------------------------------------------------
    # tm: multiple of 16 (bf16 sublane packing), bounded M-padding waste.
    tm = _round_up(M, 16) if M <= 512 else 256
    Mp = _round_up(M, tm)
    tk = _pick_tile_128(Kp, 1024)
    if fuse_ln:
        tn = Np                          # whole row needed for LN epilogue
        if Mp // tm == 1 and tm >= 32:
            # v7x megacore: single N tile -> split M so both TCs get work.
            tm = _round_up(tm // 2, 16)
            Mp = _round_up(M, tm)
    else:
        tn = _pick_tile_128(Np, 1024)
        if Mp // tm == 1 and Np == tn and Np % 256 == 0:
            tn = Np // 2                 # v7x megacore: >=2 tiles on N axis

    xp = _pad_to(x, (Mp, Kp)).astype(compute_dtype)

    use_scale = inv_sigma is not None
    scale = (inv_sigma if use_scale else jnp.ones((), jnp.float32))
    scale = scale.astype(jnp.float32).reshape(1)

    grid = (Mp // tm, Np // tn, Kp // tk)
    in_specs = [
        pl.BlockSpec((tm, tk), lambda i, j, k: (i, k)),   # activations
        pl.BlockSpec((tk, tn), lambda i, j, k: (k, j)),   # weights (cached prep)
        pl.BlockSpec((1, tn), lambda i, j, k: (0, j)),    # bias
        pl.BlockSpec(memory_space=pltpu.MemorySpace.SMEM),  # 1/sigma scalar
    ]

    if fuse_ln:
        gamma, beta, eps = ln["gamma"], ln["beta"], ln["eps"]
        affine = gamma is not None
        gp = (_pad_to(gamma.reshape(1, N), (1, Np)).astype(jnp.float32)
              if affine else jnp.ones((1, Np), jnp.float32))
        btp = (_pad_to(beta.reshape(1, N), (1, Np)).astype(jnp.float32)
               if affine else jnp.zeros((1, Np), jnp.float32))
        kernel = functools.partial(_linear_ln_kernel, activation=activation,
                                   use_scale=use_scale, n_feat=N, eps=eps,
                                   affine=affine)
        in_specs = in_specs + [
            pl.BlockSpec((1, tn), lambda i, j, k: (0, j)),
            pl.BlockSpec((1, tn), lambda i, j, k: (0, j)),
        ]
        args = (xp, w_pad, b_pad, scale, gp, btp)
    else:
        kernel = functools.partial(_linear_kernel, activation=activation,
                                   use_scale=use_scale)
        args = (xp, w_pad, b_pad, scale)

    out = pl.pallas_call(
        kernel,
        out_shape=jax.ShapeDtypeStruct((Mp, Np), out_dtype),
        grid=grid,
        in_specs=in_specs,
        out_specs=pl.BlockSpec((tm, tn), lambda i, j, k: (i, j)),
        scratch_shapes=[pltpu.VMEM((tm, tn), jnp.float32)],
        compiler_params=pltpu.CompilerParams(
            dimension_semantics=("parallel", "parallel", "arbitrary"),
            vmem_limit_bytes=_vmem_limit_bytes(),
        ),
    )(*args)
    return out[:M, :N]


def _layernorm_act_pallas(y, gamma, beta, activation, eps, out_dtype):
    M, N = y.shape
    Np = _round_up(N, 128)
    # Keep double-buffered in+out f32 row tiles well under VMEM (v7x-safe).
    rows_budget = max(8, (16 * 1024 * 1024) // (4 * 4 * Np))
    tm = max(8, min(256, (rows_budget // 8) * 8))
    tm = min(tm, _round_up(M, 8))
    Mp = _round_up(M, tm)

    yp = _pad_to(y, (Mp, Np))
    affine = gamma is not None
    gp = (_pad_to(gamma.reshape(1, N), (1, Np)).astype(jnp.float32)
          if affine else jnp.ones((1, Np), jnp.float32))
    bp = (_pad_to(beta.reshape(1, N), (1, Np)).astype(jnp.float32)
          if affine else jnp.zeros((1, Np), jnp.float32))

    kernel = functools.partial(_layernorm_act_kernel, n_feat=N, eps=eps,
                               affine=affine, activation=activation)
    out = pl.pallas_call(
        kernel,
        out_shape=jax.ShapeDtypeStruct((Mp, Np), out_dtype),
        grid=(Mp // tm,),
        in_specs=[
            pl.BlockSpec((tm, Np), lambda i: (i, 0)),
            pl.BlockSpec((1, Np), lambda i: (0, 0)),
            pl.BlockSpec((1, Np), lambda i: (0, 0)),
        ],
        out_specs=pl.BlockSpec((tm, Np), lambda i: (i, 0)),
        compiler_params=pltpu.CompilerParams(
            dimension_semantics=("parallel",),
            vmem_limit_bytes=_vmem_limit_bytes(),
        ),
    )(yp, gp, bp)
    return out[:M, :N]


# ----------------------------------------------------------------------------
# LinearBlock forward
# ----------------------------------------------------------------------------
def linear_block_forward(x, prepared, norm="none", activation="relu",
                         gamma=None, beta=None, u=None, out_dtype=None,
                         eps_ln=1e-5, compute_dtype=jnp.bfloat16,
                         ln_fuse_max_np=2048, return_sn_state=False):
    """Equivalent of LinearBlock.forward: fc -> (norm) -> (activation).

    `prepared` is the cached output of prepare_linear_params (transposed,
    padded, bf16-cast weight + padded f32 bias).  For norm='ln' pass gamma/beta;
    for norm='sn' pass the power-iteration vector `u` (updated u/v are returned
    when return_sn_state=True, mirroring PyTorch's in-place u buffer update).
    """
    if out_dtype is None:
        out_dtype = x.dtype
    Np = prepared["w_pad"].shape[1]

    inv_sigma = None
    sn_state = None
    if norm == "sn":
        assert u is not None, "norm='sn' needs the power-iteration vector u"
        sigma, u_new, v_new = spectral_norm_power_iteration(prepared["w_raw"], u)
        inv_sigma = 1.0 / sigma          # scalar; weight is NOT re-materialized
        sn_state = (u_new, v_new)

    if norm in ("none", "sn"):
        out = _matmul_pallas(x, prepared, activation, out_dtype=out_dtype,
                             inv_sigma=inv_sigma, compute_dtype=compute_dtype)
    elif norm == "ln":
        if Np <= ln_fuse_max_np:
            # Single fused kernel: fc + LayerNorm + activation.
            out = _matmul_pallas(x, prepared, activation, out_dtype=out_dtype,
                                 ln={"gamma": gamma, "beta": beta, "eps": eps_ln},
                                 compute_dtype=compute_dtype)
        else:
            # Wide-N fallback: bf16 intermediate (half the HBM traffic of f32).
            y = _matmul_pallas(x, prepared, "none", out_dtype=jnp.bfloat16,
                               compute_dtype=compute_dtype)
            out = _layernorm_act_pallas(y, gamma, beta, activation, eps_ln,
                                        out_dtype)
    else:
        # TODO(synk): norm='bn' (BatchNorm1d with running stats) and norm='in'
        # (InstanceNorm1d, needs 3-D input) are not implemented in this port.
        raise NotImplementedError(f"norm={norm!r} not implemented")

    if return_sn_state:
        return out, sn_state
    return out


# ----------------------------------------------------------------------------
# Demo / self-check
# ----------------------------------------------------------------------------
if __name__ == "__main__":
    key = jax.random.PRNGKey(0)
    kx, kw, kb, kg, ku = jax.random.split(key, 5)

    # Small shapes consistent with LinearBlock.forward(x: (batch, input_dim)).
    B, Din, Dout = 2, 32, 64
    x = jax.random.normal(kx, (B, Din), jnp.float32)
    w = jax.random.normal(kw, (Dout, Din), jnp.float32) * 0.1
    b = jax.random.normal(kb, (Dout,), jnp.float32) * 0.1
    gamma = jax.random.uniform(kg, (Dout,), jnp.float32)   # LayerNorm gamma init
    beta = jnp.zeros((Dout,), jnp.float32)
    u0 = _l2normalize(jax.random.normal(ku, (Dout,), jnp.float32))

    # One-time weight prep (cached across forward calls).
    prepared = prepare_linear_params(w, b)

    # 1) Default config: norm='none', activation='relu' (fused epilogue).
    out_relu = jax.block_until_ready(
        linear_block_forward(x, prepared, norm="none", activation="relu"))
    ref_relu = jnp.maximum(x @ w.T + b, 0.0)
    assert out_relu.shape == (B, Dout)
    assert bool(jnp.max(jnp.abs(out_relu - ref_relu)) < 5e-2)

    # 2) norm='ln', activation='tanh' — LayerNorm fused into the matmul epilogue.
    out_ln = jax.block_until_ready(
        linear_block_forward(x, prepared, norm="ln", activation="tanh",
                             gamma=gamma, beta=beta))
    y_ref = x @ w.T + b
    mean = jnp.mean(y_ref, axis=1, keepdims=True)
    std = jnp.std(y_ref, axis=1, keepdims=True, ddof=1)   # torch .std() unbiased
    ref_ln = jnp.tanh((y_ref - mean) / (std + 1e-5) * gamma + beta)
    assert bool(jnp.max(jnp.abs(out_ln - ref_ln)) < 5e-2)

    # 2b) Force the wide-N two-pass fallback path to exercise it too.
    out_ln2 = jax.block_until_ready(
        linear_block_forward(x, prepared, norm="ln", activation="tanh",
                             gamma=gamma, beta=beta, ln_fuse_max_np=0))
    assert bool(jnp.max(jnp.abs(out_ln2 - ref_ln)) < 5e-2)

    # 3) norm='sn', activation='lrelu' — 1/sigma folded into the epilogue.
    out_sn, (u1, v1) = linear_block_forward(
        x, prepared, norm="sn", activation="lrelu", u=u0, return_sn_state=True)
    out_sn = jax.block_until_ready(out_sn)
    sigma, _, _ = spectral_norm_power_iteration(w, u0)
    y_sn = x @ (w / sigma).T + b
    ref_sn = jnp.where(y_sn > 0, y_sn, 0.2 * y_sn)
    assert bool(jnp.max(jnp.abs(out_sn - ref_sn)) < 5e-2)
    assert u1.shape == (Dout,) and v1.shape == (Din,)

    for o in (out_relu, out_ln, out_ln2, out_sn):
        assert bool(jnp.all(jnp.isfinite(o)))

    print("KERNEL_OK")
</pallas_src>

<mosaic_0001>
module attributes {stable_mosaic.version = 11 : i64} {
  func.func @_linear_kernel(%arg0: i32, %arg1: i32, %arg2: i32, %arg3: memref<16x128xbf16, #tpu.memory_space<vmem>>, %arg4: memref<128x128xbf16, #tpu.memory_space<vmem>>, %arg5: memref<1x128xf32, #tpu.memory_space<vmem>>, %arg6: memref<1xf32, #tpu.memory_space<smem>>, %arg7: memref<16x128xf32, #tpu.memory_space<vmem>>, %arg8: memref<16x128xf32, #tpu.memory_space<vmem>>) attributes {dimension_semantics = [#tpu.dimension_semantics<parallel>, #tpu.dimension_semantics<parallel>, #tpu.dimension_semantics<arbitrary>], iteration_bounds = array<i64: 1, 1, 1>, scalar_prefetch = 0 : i64, scratch_operands = 1 : i64, tpu.core_type = #tpu.core_type<tc>, window_params = [{transform_indices = @transform_0, window_bounds = array<i64: 16, 128>}, {transform_indices = @transform_1, window_bounds = array<i64: 128, 128>}, {transform_indices = @transform_2, window_bounds = array<i64: 1, 128>}, {transform_indices = @transform_3, window_bounds = array<i64: 1>}, {transform_indices = @transform_4, window_bounds = array<i64: 16, 128>}]} {
    %c0 = arith.constant 0 : index
    %c0_0 = arith.constant 0 : index
    %0 = vector.load %arg3[%c0, %c0_0] : memref<16x128xbf16, #tpu.memory_space<vmem>>, vector<16x128xbf16>
    %c0_1 = arith.constant 0 : index
    %c0_2 = arith.constant 0 : index
    %1 = vector.load %arg4[%c0_1, %c0_2] : memref<128x128xbf16, #tpu.memory_space<vmem>>, vector<128x128xbf16>
    %cst = arith.constant dense<0.000000e+00> : vector<16x128xf32>
    %2 = tpu.matmul %0, %1, %cst {dimension_numbers = #tpu.dot_dimension_numbers<[1], [0], [0], [1], [0, 0, 1, 1], [], []>} : vector<16x128xbf16>, vector<128x128xbf16>, vector<16x128xf32> -> vector<16x128xf32>
    %c0_i32 = arith.constant 0 : i32
    %3 = arith.cmpi eq, %arg2, %c0_i32 : i32
    %4 = arith.extui %3 : i1 to i32
    %c0_i32_3 = arith.constant 0 : i32
    %5 = arith.cmpi ne, %4, %c0_i32_3 : i32
    scf.if %5 {
      %c0_8 = arith.constant 0 : index
      %c0_9 = arith.constant 0 : index
      %12 = vector.load %arg8[%c0_8, %c0_9] : memref<16x128xf32, #tpu.memory_space<vmem>>, vector<16x128xf32>
      tpu.vector_store %arg8[%c0_8, %c0_9], %2 {strides = array<i32>} : memref<16x128xf32, #tpu.memory_space<vmem>>, vector<16x128xf32>,
    } else {
    }
    %c0_i32_4 = arith.constant 0 : i32
    %6 = arith.cmpi ne, %arg2, %c0_i32_4 : i32
    %7 = arith.extui %6 : i1 to i32
    %c0_i32_5 = arith.constant 0 : i32
    %8 = arith.cmpi ne, %7, %c0_i32_5 : i32
    scf.if %8 {
      %c0_8 = arith.constant 0 : index
      %c0_9 = arith.constant 0 : index
      %12 = vector.load %arg8[%c0_8, %c0_9] : memref<16x128xf32, #tpu.memory_space<vmem>>, vector<16x128xf32>
      %13 = arith.addf %12, %2 : vector<16x128xf32>
      %c0_10 = arith.constant 0 : index
      %c0_11 = arith.constant 0 : index
      %14 = vector.load %arg8[%c0_10, %c0_11] : memref<16x128xf32, #tpu.memory_space<vmem>>, vector<16x128xf32>
      tpu.vector_store %arg8[%c0_10, %c0_11], %13 {strides = array<i32>} : memref<16x128xf32, #tpu.memory_space<vmem>>, vector<16x128xf32>,
    } else {
    }
    %c0_i32_6 = arith.constant 0 : i32
    %9 = arith.cmpi eq, %arg2, %c0_i32_6 : i32
    %10 = arith.extui %9 : i1 to i32
    %c0_i32_7 = arith.constant 0 : i32
    %11 = arith.cmpi ne, %10, %c0_i32_7 : i32
    scf.if %11 {
      %c0_8 = arith.constant 0 : index
      %c0_9 = arith.constant 0 : index
      %12 = vector.load %arg8[%c0_8, %c0_9] : memref<16x128xf32, #tpu.memory_space<vmem>>, vector<16x128xf32>
      %c0_10 = arith.constant 0 : index
      %c0_11 = arith.constant 0 : index
      %13 = vector.load %arg5[%c0_10, %c0_11] : memref<1x128xf32, #tpu.memory_space<vmem>>, vector<1x128xf32>
      %14 = vector.broadcast %13 : vector<1x128xf32> to vector<16x128xf32>
      %15 = arith.addf %12, %14 : vector<16x128xf32>
      %cst_12 = arith.constant 0.000000e+00 : f32
      %16 = vector.broadcast %cst_12 : f32 to vector<16x128xf32>
      %17 = arith.maximumf %15, %16 : vector<16x128xf32>
      %c0_13 = arith.constant 0 : index
      %c0_14 = arith.constant 0 : index
      %18 = vector.load %arg7[%c0_13, %c0_14] : memref<16x128xf32, #tpu.memory_space<vmem>>, vector<16x128xf32>
      tpu.vector_store %arg7[%c0_13, %c0_14], %17 {strides = array<i32>} : memref<16x128xf32, #tpu.memory_space<vmem>>, vector<16x128xf32>,
    } else {
    }
    return
  }
  func.func @transform_0(%arg0: i32, %arg1: i32, %arg2: i32) -> (i32, i32) {
    %c0_i32 = arith.constant 0 : i32
    return %arg0, %arg2 : i32, i32
  }
  func.func @transform_1(%arg0: i32, %arg1: i32, %arg2: i32) -> (i32, i32) {
    %c0_i32 = arith.constant 0 : i32
    return %arg2, %arg1 : i32, i32
  }
  func.func @transform_2(%arg0: i32, %arg1: i32, %arg2: i32) -> (i32, i32) {
    %c0_i32 = arith.constant 0 : i32
    %c0_i32_0 = arith.constant 0 : i32
    return %c0_i32, %arg1 : i32, i32
  }
  func.func @transform_3(%arg0: i32, %arg1: i32, %arg2: i32) -> i32 {
    %c0_i32 = arith.constant 0 : i32
    %c0_i32_0 = arith.constant 0 : i32
    return %c0_i32 : i32
  }
  func.func @transform_4(%arg0: i32, %arg1: i32, %arg2: i32) -> (i32, i32) {
    %c0_i32 = arith.constant 0 : i32
    return %arg0, %arg1 : i32, i32
  }
}

</mosaic_0001>

<bundles_post_ra>
// kernel: tpu_custom_call.1
= control target key start
LH: loop header
LB: loop body
LE: loop exit
PB: predicated region body
PF: predicated region fallthrough
CT: control target
= control target key end

     0   :  { %10 = vsyncpa [#allocation5], 0  ;;  %s382_s0 = inlined_call_operand.hbm [shape: bf16[16,128], index: 0, kind: input, shape index: {}]   ;;  %s383_s1 = inlined_call_operand.hbm [shape: bf16[128,128], index: 1, kind: input, shape index: {}]   ;;  %s384_s2 = inlined_call_operand.vmem [shape: f32[1,128], index: 2, kind: input, shape index: {}]   ;;  %s385_s3 = inlined_call_operand.<no memory space> [shape: f32[1], index: 3, kind: input, shape index: {}]   ;;  %s386_s4 = inlined_call_operand.hbm [shape: f32[16,128], index: 4, kind: output, shape index: {}]  }
   0x1   :  { %11 = vsyncpa [#allocation8], 0 }
   0x2   :  { %12 = vsyncpa [#allocation6], 0  ;;  %s336_s15 = smov [#allocation4]  }
   0x3   :  { %s18_s16 = sshll.u32 %s336_s15, 4  ;;  %s19_s16 = int_to_ptr.vmem [resolvable:$true] %s18_s16 }
   0x4   :  { %s278_s17 = scalar_lea.vmem %s19_s16, 128  ;;  %p283_p1 = scmp.lt.s32.totalorder %s19_s16, %s19_s16 }
   0x5   :  { %p279_p0 = scmp.ne.s32.totalorder %s19_s16, %s278_s17  ;;  %p284_p2 = scmp.lt.s32.totalorder %s278_s17, %s278_s17 }
   0x7   :  { %p285_p3 = por %p284_p2, %p283_p1 }
   0x9   :  { %p286_p4 = pnand %p285_p3, %p279_p0 }
   0xb   :  { %289 = shalt.err (!%p286_p4)
}
   0xc   :  { %s337_s18 = smov 64   ;;  %s338_s19 = smov 4  }
   0xd   :  { %24 = dma.hbm_to_vmem [thread:$0]  %s382_s0, 128, %s19_s16, [#allocation5], %s337_s18, %s337_s18, %s338_s19  }
   0xe   :  { %s339_s21 = smov [#allocation7]  }
   0xf   :  { %s30_s22 = sshll.u32 %s339_s21, 4  ;;  %s31_s22 = int_to_ptr.vmem [resolvable:$true] %s30_s22 }
  0x10   :  { %s298_s23 = scalar_lea.vmem %s31_s22, 1024  ;;  %p303_p6 = scmp.lt.s32.totalorder %s31_s22, %s31_s22 }
  0x11   :  { %p299_p5 = scmp.ne.s32.totalorder %s31_s22, %s298_s23  ;;  %p304_p7 = scmp.lt.s32.totalorder %s298_s23, %s298_s23 }
  0x13   :  { %p305_p8 = por %p304_p7, %p303_p6 }
  0x15   :  { %p306_p9 = pnand %p305_p8, %p299_p5 }
  0x17   :  { %309 = shalt.err (!%p306_p9)
}
  0x18   :  { %36 = dma.hbm_to_vmem [thread:$0]  %s383_s1, 1024, %s31_s22, [#allocation8], %s337_s18, %s337_s18, %s338_s19  }
  0x19   :  { %330 = dma.done.wait [#allocation5], 128  }
  0x1a   :  { %331 = vsyncadd [#allocation5], 4294967168 }
  0x1b   :  { %332 = dma.done.wait [#allocation8], 1024  }
  0x1c   :  { %333 = vsyncadd [#allocation8], 4294966272  ;;  %v340_v0 = vmov 0.0   ;;  %vm341_vm0 = vmmov 0   ;;  %v261_v1 = vld [vmem:[#allocation7 + $0x38] sm:$0xff]   ;;  %v262_v2 = vld [vmem:[#allocation7 + $0x30] sm:$0xff]  }
  0x1d   :  { %232 = vmatprep.subr.bf16.mxu0 %v340_v0  ;;  %248 = vmatprep.mubr.msk.bf16.mxu0 %vm341_vm0, %v340_v0  ;;  %v263_v3 = vld [vmem:[#allocation7 + $0x28] sm:$0xff]   ;;  %v264_v4 = vld [vmem:[#allocation7 + $0x20] sm:$0xff]   ;;  %v265_v5 = vld [vmem:[#allocation7 + $0x18] sm:$0xff]   ;;  %s342_s26 = smov [#allocation9]  }
  0x1e   :  { %233 = vmatpush3.bf16.msra.mxu0 %v261_v1  ;;  %v266_v6 = vld [vmem:[#allocation7 + $0x10] sm:$0xff]   ;;  %v267_v7 = vld [vmem:[#allocation7 + $0x8] sm:$0xff]   ;;  %v268_v8 = vld [vmem:[#allocation7] sm:$0xff]   ;;  %s200_s27 = sshll.u32 %s342_s26, 4  ;;  %s201_s27 = int_to_ptr.vmem [resolvable:$true] %s200_s27 }
  0x1f   :  { %234 = vmatprep.subr.bf16.mxu0 %v340_v0  ;;  %v269_v9 = vld [vmem:[#allocation4] sm:$0xff]   ;;  %s310_s28 = scalar_lea.vmem %s201_s27, 256  ;;  %p315_p11 = scmp.lt.s32.totalorder %s201_s27, %s201_s27 }
  0x20   :  { %v222_v10 = vld [vmem:[%s384_s2] ss:$0 sm:$0xff]  ;;  %p311_p10 = scmp.ne.s32.totalorder %s201_s27, %s310_s28  ;;  %p316_p12 = scmp.lt.s32.totalorder %s310_s28, %s310_s28 }
  0x22   :  { %235 = vmatpush3.bf16.msra.mxu0 %v262_v2  ;;  %p317_p13 = por %p316_p12, %p315_p11 }
  0x23   :  { %236 = vmatprep.subr.bf16.mxu0 %v340_v0 }
  0x24   :  { %p318_p0 = pnand %p317_p13, %p311_p10 }
  0x26   :  { %237 = vmatpush3.bf16.msra.mxu0 %v263_v3 }
  0x27   :  { %238 = vmatprep.subr.bf16.mxu0 %v340_v0 }
  0x2a   :  { %239 = vmatpush3.bf16.msra.mxu0 %v264_v4 }
  0x2b   :  { %240 = vmatprep.subr.bf16.mxu0 %v340_v0 }
  0x2e   :  { %241 = vmatpush3.bf16.msra.mxu0 %v265_v5 }
  0x2f   :  { %242 = vmatprep.subr.bf16.mxu0 %v340_v0 }
  0x32   :  { %243 = vmatpush3.bf16.msra.mxu0 %v266_v6 }
  0x33   :  { %244 = vmatprep.subr.bf16.mxu0 %v340_v0 }
  0x36   :  { %245 = vmatpush3.bf16.msra.mxu0 %v267_v7 }
  0x37   :  { %246 = vmatprep.subr.bf16.mxu0 %v340_v0 }
  0x3a   :  { %247 = vmatpush3.bf16.msra.mxu0 %v268_v8 }
  0x3d   :  { %249 = vmatmul.mubr.bf16.vlgmr.msra.gmra.mxu0 %v269_v9 }
  0xfd   :  { %v154_v11 = vpop.f32.mrf.mxu0 }
  0xfe   :  { %v189_v12 = vadd.f32 %v222_v10, %v154_v11 }
  0xff   :  { %v250_v13 = vpop.f32.mrf.mxu0 }
 0x100   :  { %v191_v14 = vmax.f32 %v189_v12, 0.0 }
 0x101   :  { %v157_v15 = vpop.f32.mrf.mxu0 }
 0x102   :  { %193 = vst [vmem:[#allocation9] sm:$0xff] %v191_v14  ;;  %v190_v16 = vadd.f32 %v222_v10, %v157_v15 }
 0x103   :  { %v251_v17 = vpop.f32.mrf.mxu0 }
 0x104   :  { %v192_v18 = vmax.f32 %v190_v16, 0.0 }
 0x106   :  { %194 = vst [vmem:[#allocation9 + $0x8] sm:$0xff] %v192_v18 }
 0x107   :  { %321 = shalt.err (!%p318_p0)
}
 0x108   :  { %s343_s2 = smov 128   ;;  %s344_s29 = smov 8  }
 0x109   :  { %206 = dma.vmem_to_hbm [thread:$0]  %s201_s27, 256, %s386_s4, [#allocation6], %s343_s2, %s343_s2, %s344_s29  }
 0x10a   :  { %334 = dma.done.wait [#allocation6], 256  }
 0x10b   :  { %335 = vsyncadd [#allocation6], 4294967040 }
 0x10c   :  { %210 = vsyncpa [#allocation5], 1 }
 0x10d   :  { %211 = vsyncpa [#allocation8], 1 }
 0x10e   :  { %212 = vsyncpa [#allocation6], 1 }

</bundles_post_ra>
